<compile_context>
chip_gen: v7x
topology: tpu7x:2x2x1
jax: 0.10.0
libtpu: 0.0.40
codegen_flags: <defaults>
</compile_context>

<pallas_src>
import functools

import jax
import jax.numpy as jnp
from jax import lax
from jax.experimental import pallas as pl
from jax.experimental.pallas import tpu as pltpu


def _round_up(x, m):
    return ((x + m - 1) // m) * m


# ----------------------------------------------------------------------------
# CP decomposition (parafac-style ALS) — batched plain-JAX glue.
# TODO(synk): tensorly.parafac's randomized init / pinv behaviour has no Pallas
# equivalent; a deterministic ALS with regularized normal-equation solves is used
# instead (accepted numerical divergence from the PyTorch reference).
# ----------------------------------------------------------------------------
def _khatri_rao(mats):
    rank = mats[0].shape[1]
    out = mats[0]
    for m in mats[1:]:
        out = (out[:, None, :] * m[None, :, :]).reshape(-1, rank)
    return out


def _unfold(x, mode):
    return jnp.moveaxis(x, mode, 0).reshape(x.shape[mode], -1)


def cp_als(x, rank, key, n_iter=10):
    """CP decomposition of a 3-way tensor x (c, h, w) -> factors [(c,R),(h,R),(w,R)]."""
    ndim = x.ndim
    keys = jax.random.split(key, ndim)
    factors = tuple(
        jax.random.normal(k, (d, rank), dtype=x.dtype)
        for k, d in zip(keys, x.shape)
    )
    eye = jnp.eye(rank, dtype=x.dtype)
    unfolds = tuple(_unfold(x, n) for n in range(ndim))  # mode-n unfoldings are constant

    def body(_, factors):
        factors = list(factors)
        for n in range(ndim):
            others = [factors[m] for m in range(ndim) if m != n]
            kr = _khatri_rao(others)                               # (prod(d_m), R)
            v = jnp.ones((rank, rank), dtype=x.dtype)
            for m in range(ndim):
                if m != n:
                    v = v * (factors[m].T @ factors[m])
            mttkrp = unfolds[n] @ kr                               # (d_n, R)
            factors[n] = jnp.linalg.solve(v + 1e-6 * eye, mttkrp.T).T
        return tuple(factors)

    return lax.fori_loop(0, n_iter, body, factors)


# ----------------------------------------------------------------------------
# Pallas kernel: fused hash MLP  (Linear -> ReLU -> Linear), padded / lane-dense.
# ----------------------------------------------------------------------------
def hash_mlp_kernel(x_ref, w1_ref, b1_ref, w2_ref, b2_ref, cont_ref):
    # bf16 MXU inputs, f32 accumulation; bias add + ReLU stay in f32 on the VPU.
    h1 = jnp.dot(x_ref[...], w1_ref[...], preferred_element_type=jnp.float32)
    h1 = jnp.maximum(h1 + b1_ref[...], 0.0)                        # (tm, H1_pad) f32
    cont = jnp.dot(h1.astype(w2_ref.dtype), w2_ref[...],
                   preferred_element_type=jnp.float32)
    cont_ref[...] = cont + b2_ref[...]                             # (tm, H_pad) f32, lane-dense


def hash_mlp(factor_batch, w1p, b1p, w2p, b2p):
    """factor_batch (B, F) f32 -> continuous hash, padded (B_pad, H_pad) f32."""
    B, F = factor_batch.shape
    F_pad, H1_pad = w1p.shape
    H_pad = w2p.shape[1]

    # Zero-pad the feature dim to the padded weight extent (padded weight rows are zero,
    # so the sliced-back result equals the unpadded computation).
    if F_pad > F:
        factor_batch = jnp.pad(factor_batch, ((0, 0), (0, F_pad - F)))

    # Batch tiling: MXU-sized tiles for large B, 16-aligned (bf16 sublane pack) otherwise.
    tm = 256 if B >= 256 else _round_up(B, 16)
    B_pad = _round_up(B, tm)
    if B_pad > B:
        factor_batch = jnp.pad(factor_batch, ((0, B_pad - B), (0, 0)))

    xb = factor_batch.astype(jnp.bfloat16)
    w1b = w1p.astype(jnp.bfloat16)
    w2b = w2p.astype(jnp.bfloat16)

    cost = pl.CostEstimate(
        flops=2 * B_pad * F_pad * H1_pad + 2 * B_pad * H1_pad * H_pad,
        transcendentals=0,
        bytes_accessed=(B_pad * F_pad * 2 + F_pad * H1_pad * 2 + H1_pad * H_pad * 2
                        + H1_pad * 4 + H_pad * 4 + B_pad * H_pad * 4),
    )

    return pl.pallas_call(
        hash_mlp_kernel,
        out_shape=jax.ShapeDtypeStruct((B_pad, H_pad), jnp.float32),
        grid=(B_pad // tm,),
        in_specs=[
            pl.BlockSpec((tm, F_pad), lambda i: (i, 0)),
            pl.BlockSpec((F_pad, H1_pad), lambda i: (0, 0)),   # weights stay VMEM-resident
            pl.BlockSpec((1, H1_pad), lambda i: (0, 0)),
            pl.BlockSpec((H1_pad, H_pad), lambda i: (0, 0)),
            pl.BlockSpec((1, H_pad), lambda i: (0, 0)),
        ],
        out_specs=pl.BlockSpec((tm, H_pad), lambda i: (i, 0)),
        compiler_params=pltpu.CompilerParams(
            dimension_semantics=("parallel",),                 # megacore: shard batch tiles
        ),
        cost_estimate=cost,
    )(xb, w1b, b1p, w2b, b2p)


# ----------------------------------------------------------------------------
# Batched forward (jitted): vmapped ALS + fused Pallas MLP.
# ----------------------------------------------------------------------------
@functools.partial(jax.jit, static_argnames=("rank", "n_iter", "hash_length"))
def cphash_forward(x_bchw, keys, w1p, b1p, w2p, b2p, *, rank, n_iter, hash_length):
    def one(xi, ki):
        A, Bm, Cm = cp_als(xi, rank, ki, n_iter=n_iter)
        return jnp.concatenate([A.reshape(-1), Bm.reshape(-1), Cm.reshape(-1)])

    factor_batch = jax.vmap(one)(x_bchw, keys).astype(jnp.float32)   # (B, F)
    B = x_bchw.shape[0]
    cont_pad = hash_mlp(factor_batch, w1p, b1p, w2p, b2p)
    continuous_hash = cont_pad[:B, :hash_length]
    # Forward value of the STE binary hash equals sign(continuous_hash).
    # TODO(synk): straight-through gradients (detach trick) not implemented (forward-only).
    binary_hash = jnp.sign(continuous_hash)
    return binary_hash, continuous_hash


# ----------------------------------------------------------------------------
# CPHashLayer (JAX wrapper around the Pallas kernel)
# ----------------------------------------------------------------------------
class CPHashLayerJAX:
    def __init__(self, input_shape, rank=8, hash_length=16, key=None):
        self.input_shape = input_shape          # (h, w, c)
        self.rank = rank
        self.hash_length = hash_length
        F = rank * sum(input_shape)
        hidden = F // 2
        self.F = F
        F_pad = _round_up(F, 128)
        H1_pad = _round_up(hidden, 128)
        H_pad = _round_up(hash_length, 128)

        if key is None:
            key = jax.random.PRNGKey(42)
        k1, k2, k3, k4 = jax.random.split(key, 4)
        s1 = 1.0 / jnp.sqrt(jnp.float32(F))
        s2 = 1.0 / jnp.sqrt(jnp.float32(hidden))
        w1 = jax.random.uniform(k1, (F, hidden), minval=-s1, maxval=s1, dtype=jnp.float32)
        b1 = jax.random.uniform(k2, (1, hidden), minval=-s1, maxval=s1, dtype=jnp.float32)
        w2 = jax.random.uniform(k3, (hidden, hash_length), minval=-s2, maxval=s2,
                                dtype=jnp.float32)
        b2 = jax.random.uniform(k4, (1, hash_length), minval=-s2, maxval=s2,
                                dtype=jnp.float32)

        # Zero-pad weights to MXU/lane-friendly extents; padded rows/cols contribute 0,
        # so the sliced-back result is identical to the unpadded computation.
        self.w1p = jnp.zeros((F_pad, H1_pad), jnp.float32).at[:F, :hidden].set(w1)
        self.b1p = jnp.zeros((1, H1_pad), jnp.float32).at[:, :hidden].set(b1)
        self.w2p = jnp.zeros((H1_pad, H_pad), jnp.float32).at[:hidden, :hash_length].set(w2)
        self.b2p = jnp.zeros((1, H_pad), jnp.float32).at[:, :hash_length].set(b2)

    def __call__(self, x, training=True, key=None):
        """x: [B, C, H, W] float32 -> (binary_hash [B, L], continuous_hash [B, L])."""
        h, w, c = self.input_shape
        batch_size = x.shape[0]
        reshaped_x = x.reshape(batch_size, c, h, w)
        if key is None:
            key = jax.random.PRNGKey(0)
        keys = jax.random.split(key, batch_size)
        # training vs eval produce the same forward values (STE only changes grads).
        return cphash_forward(reshaped_x, keys, self.w1p, self.b1p, self.w2p, self.b2p,
                              rank=self.rank, n_iter=10, hash_length=self.hash_length)


if __name__ == "__main__":
    # Small shapes: input_shape=(h=16, w=16, c=4), rank=8, hash_length=16.
    h, w, c = 16, 16, 4
    rank, hash_length = 8, 16
    B = 2

    layer = CPHashLayerJAX((h, w, c), rank=rank, hash_length=hash_length,
                           key=jax.random.PRNGKey(1))

    key = jax.random.PRNGKey(0)
    x = jax.random.normal(key, (B, c, h, w), dtype=jnp.float32)  # NCHW

    binary_hash, continuous_hash = layer(x, training=True, key=jax.random.PRNGKey(2))
    jax.block_until_ready(binary_hash)
    jax.block_until_ready(continuous_hash)

    assert binary_hash.shape == (B, hash_length)
    assert continuous_hash.shape == (B, hash_length)
    assert bool(jnp.all(jnp.abs(binary_hash) <= 1.0))
    assert bool(jnp.all(jnp.isfinite(continuous_hash)))
    print("KERNEL_OK")
</pallas_src>

<mosaic_0001>
module attributes {stable_mosaic.version = 11 : i64} {
  func.func @hash_mlp_kernel(%arg0: i32, %arg1: memref<16x384xbf16, #tpu.memory_space<vmem>>, %arg2: memref<384x256xbf16, #tpu.memory_space<vmem>>, %arg3: memref<1x256xf32, #tpu.memory_space<vmem>>, %arg4: memref<256x128xbf16, #tpu.memory_space<vmem>>, %arg5: memref<1x128xf32, #tpu.memory_space<vmem>>, %arg6: memref<16x128xf32, #tpu.memory_space<vmem>>) attributes {dimension_semantics = [#tpu.dimension_semantics<parallel>], iteration_bounds = array<i64: 1>, scalar_prefetch = 0 : i64, scratch_operands = 0 : i64, tpu.core_type = #tpu.core_type<tc>, window_params = [{transform_indices = @transform_0, window_bounds = array<i64: 16, 384>}, {pipeline_mode = #tpu.pipeline_mode<synchronous>, transform_indices = @transform_1, window_bounds = array<i64: 384, 256>}, {pipeline_mode = #tpu.pipeline_mode<synchronous>, transform_indices = @transform_2, window_bounds = array<i64: 1, 256>}, {pipeline_mode = #tpu.pipeline_mode<synchronous>, transform_indices = @transform_3, window_bounds = array<i64: 256, 128>}, {pipeline_mode = #tpu.pipeline_mode<synchronous>, transform_indices = @transform_4, window_bounds = array<i64: 1, 128>}, {transform_indices = @transform_5, window_bounds = array<i64: 16, 128>}]} {
    %c0 = arith.constant 0 : index
    %c0_0 = arith.constant 0 : index
    %0 = vector.load %arg1[%c0, %c0_0] : memref<16x384xbf16, #tpu.memory_space<vmem>>, vector<16x384xbf16>
    %c0_1 = arith.constant 0 : index
    %c0_2 = arith.constant 0 : index
    %1 = vector.load %arg2[%c0_1, %c0_2] : memref<384x256xbf16, #tpu.memory_space<vmem>>, vector<384x256xbf16>
    %cst = arith.constant dense<0.000000e+00> : vector<16x256xf32>
    %2 = tpu.matmul %0, %1, %cst {dimension_numbers = #tpu.dot_dimension_numbers<[1], [0], [0], [1], [0, 0, 1, 1], [], []>} : vector<16x384xbf16>, vector<384x256xbf16>, vector<16x256xf32> -> vector<16x256xf32>
    %c0_3 = arith.constant 0 : index
    %c0_4 = arith.constant 0 : index
    %3 = vector.load %arg3[%c0_3, %c0_4] : memref<1x256xf32, #tpu.memory_space<vmem>>, vector<1x256xf32>
    %4 = vector.broadcast %3 : vector<1x256xf32> to vector<16x256xf32>
    %5 = arith.addf %2, %4 : vector<16x256xf32>
    %cst_5 = arith.constant 0.000000e+00 : f32
    %6 = vector.broadcast %cst_5 : f32 to vector<16x256xf32>
    %7 = arith.maximumf %5, %6 : vector<16x256xf32>
    %8 = arith.truncf %7 : vector<16x256xf32> to vector<16x256xbf16>
    %c0_6 = arith.constant 0 : index
    %c0_7 = arith.constant 0 : index
    %9 = vector.load %arg4[%c0_6, %c0_7] : memref<256x128xbf16, #tpu.memory_space<vmem>>, vector<256x128xbf16>
    %cst_8 = arith.constant dense<0.000000e+00> : vector<16x128xf32>
    %10 = tpu.matmul %8, %9, %cst_8 {dimension_numbers = #tpu.dot_dimension_numbers<[1], [0], [0], [1], [0, 0, 1, 1], [], []>} : vector<16x256xbf16>, vector<256x128xbf16>, vector<16x128xf32> -> vector<16x128xf32>
    %c0_9 = arith.constant 0 : index
    %c0_10 = arith.constant 0 : index
    %11 = vector.load %arg5[%c0_9, %c0_10] : memref<1x128xf32, #tpu.memory_space<vmem>>, vector<1x128xf32>
    %12 = vector.broadcast %11 : vector<1x128xf32> to vector<16x128xf32>
    %13 = arith.addf %10, %12 : vector<16x128xf32>
    %c0_11 = arith.constant 0 : index
    %c0_12 = arith.constant 0 : index
    %14 = vector.load %arg6[%c0_11, %c0_12] : memref<16x128xf32, #tpu.memory_space<vmem>>, vector<16x128xf32>
    tpu.vector_store %arg6[%c0_11, %c0_12], %13 {strides = array<i32>} : memref<16x128xf32, #tpu.memory_space<vmem>>, vector<16x128xf32>,
    return
  }
  func.func @transform_0(%arg0: i32) -> (i32, i32) {
    %c0_i32 = arith.constant 0 : i32
    %c0_i32_0 = arith.constant 0 : i32
    return %arg0, %c0_i32 : i32, i32
  }
  func.func @transform_1(%arg0: i32) -> (i32, i32) {
    %c0_i32 = arith.constant 0 : i32
    %c0_i32_0 = arith.constant 0 : i32
    %c0_i32_1 = arith.constant 0 : i32
    return %c0_i32, %c0_i32_0 : i32, i32
  }
  func.func @transform_2(%arg0: i32) -> (i32, i32) {
    %c0_i32 = arith.constant 0 : i32
    %c0_i32_0 = arith.constant 0 : i32
    %c0_i32_1 = arith.constant 0 : i32
    return %c0_i32, %c0_i32_0 : i32, i32
  }
  func.func @transform_3(%arg0: i32) -> (i32, i32) {
    %c0_i32 = arith.constant 0 : i32
    %c0_i32_0 = arith.constant 0 : i32
    %c0_i32_1 = arith.constant 0 : i32
    return %c0_i32, %c0_i32_0 : i32, i32
  }
  func.func @transform_4(%arg0: i32) -> (i32, i32) {
    %c0_i32 = arith.constant 0 : i32
    %c0_i32_0 = arith.constant 0 : i32
    %c0_i32_1 = arith.constant 0 : i32
    return %c0_i32, %c0_i32_0 : i32, i32
  }
  func.func @transform_5(%arg0: i32) -> (i32, i32) {
    %c0_i32 = arith.constant 0 : i32
    %c0_i32_0 = arith.constant 0 : i32
    return %arg0, %c0_i32 : i32, i32
  }
}

</mosaic_0001>

<bundles_post_ra>
// kernel: custom-call.61
= control target key start
LH: loop header
LB: loop body
LE: loop exit
PB: predicated region body
PF: predicated region fallthrough
CT: control target
= control target key end

     0   :  { %5 = vsyncpa [#allocation4], 0  ;;  %s888_s0 = inlined_call_operand.vmem [shape: f32[2,8,8], index: 0, kind: input, shape index: {}]   ;;  %s889_s1 = inlined_call_operand.vmem [shape: f32[2,8,8], index: 1, kind: output, shape index: {0}]   ;;  %s890_s2 = inlined_call_operand.hbm [shape: s32[2,8], index: 2, kind: output, shape index: {1}]   ;;  %s891_s3 = inlined_call_operand.vmem [shape: s32[2,8], index: 3, kind: output, shape index: {2}]  }
   0x1   :  { %7 = vsyncpa [#allocation4 + $0x1], 0  ;;  %s707_s12 = smov 0   ;;  %s709_s13 = smov 0  }
   0x2   :  { %s711_s14 = smov 0   ;;  %s713_s15 = smov 0  }
   0x3 LB: > { %s728_s16 = sadd.s32 4294967295, %s679_s15   ;;  %s542_s17 = sadd.s32 4294967294, %s679_s15   ;;  %s679_s15 = sphi %s713_s15, %s899_s15   ;;  %s675_s14 = sphi %s711_s14, %s898_s14   ;;  %s671_s13 = sphi %s709_s13, %s897_s13   ;;  %s667_s12 = sphi %s707_s12, %s896_s12  }
   0x4   : > { %s732_s18 = sadd.s32 1, %s679_s15   ;;  %s17_s19 = sshrl.u32 %s679_s15, 3 }
   0x5   : > { %s18_s20 = sshrl.u32 %s732_s18, 3  ;;  %s22_s21 = sadd.s32 1, %s675_s14 }
   0x6   : > { %s19_s22 = ssub.s32 %s17_s19, %s18_s20  ;;  %p32_p0 = scmp.ne.s32.totalorder %s675_s14, %s671_s13 }
   0x7   : > { %p20_p1 = scmp.eq.s32.totalorder %s19_s22, 0  ;;  %p33_p2 = scmp.eq.s32.totalorder %s728_s16, 1 }
   0x8   : > { %p38_p3 = scmp.ne.s32.totalorder %s671_s13, %s667_s12  ;;  %p39_p4 = scmp.eq.s32.totalorder %s542_s17, 1 }
   0x9   : > { %s743_s23 = scalar_select %p20_p1, %s675_s14, %s22_s21  }
   0xa   : > { %p745_p5 = por %p33_p2, %p32_p0  ;;  %p749_p6 = por %p39_p4, %p38_p3 }
   0xb   : > { %p544_p7 = scmp.ge.s32.totalorder %s679_s15, 2 }
   0xc   : > { %s85_s26 = sand.u32 (!%p544_p7), 1, %s679_s15   ;;  %s546_s27 = sshll.u32 (!%p544_p7), %s679_s15, 3 }
   0xd   : > { %83 = sbr.rel (%p544_p7) target bundleno = 20 (0x14), region = 16  ;;  %s545_s28 = sshll.u32 (!%p544_p7), %s85_s26, 3 }
   0xe   : > { %s89_s4 = scalar_lea.vmem (!%p544_p7), %s888_s0, %s546_s27  ;;  %s87_s5 = scalar_lea.vmem (!%p544_p7), [#allocation0], %s545_s28 }
   0xf   : > { %v117_v0 = vld [vmem:[%s89_s4] sm:$0xff] (!%p544_p7) }
  0x10   : > { %118 = vst [vmem:[%s87_s5] sm:$0xff] (!%p544_p7), %v117_v0 }
  0x14 PF: > { %p547_p8 = scmp.ge.s32.totalorder %s679_s15, 1  ;;  %p123_p9 = scmp.lt.s32.totalorder %s679_s15, 3 }
  0x16   : > { %p124_p10 = pnand %p547_p8, %p123_p9 }
  0x18   : > { %127 = sbr.rel (%p124_p10) target bundleno = 441 (0x1b9), region = 54 }
  0x1f   : > { %s130_s6 = sand.u32 1, %s728_s16   ;;  %s145_s7 = sand.u32 1, %s671_s13   ;;  %v163_v1 = vlaneseq  ;;  %v685_v4 = vmov 0  }
  0x20   : > { %s548_s8 = sshll.u32 %s130_s6, 3  ;;  %s767_s9 = sshll.u32 %s145_s7, 1 }
  0x21   : > { %v770_v2 = vshrl.u32 %v163_v1, 7  ;;  %s132_s10 = scalar_lea.vmem [#allocation0], %s548_s8  ;;  %s772_s11 = scalar_lea.vmem [#allocation1], %s548_s8 }
  0x22   : > { %v156_v3 = vld [vmem:[%s132_s10] sm:$0xff]  ;;  %s158_s17 = sand.u32 7, %s728_s16   ;;  %s147_s20 = scalar_lea.vmem [#allocation3], %s767_s9 }
  0x23   : > { %157 = vst [vmem:[%s772_s11] sm:$0xff] %v156_v3  ;;  %167 = vst [vmem:[#allocation7] sm:$0xff] %v770_v2  ;;  %s777_s19 = scalar_lea.vmem [#allocation2], %s158_s17  ;;  %s153_s21 = scalar_lea.vmem [#allocation6], %s767_s9 }
  0x24   : > { %162 = vst [vmem:[%s777_s19] sm:$0x1] %v685_v4  ;;  %s782_s22 = scalar_lea.vmem [#allocation5], %s158_s17  ;;  %s784_s26 = smov 0  }
  0x25 LB: >> { %v791_v7 = vstv %s683_s26  ;;  %s224_s27 = ssub.s32 128, %s683_s26  ;;  %v230_v37 = vand.u32 127, %v163_v1  ;;  %s236_s28 = scalar_lea.vmem %s772_s11, %s683_s26 [#allocation1]  ;;  %s683_s26 = sphi %s784_s26, %s173_s26  }
  0x26   : >> { %vm182_vm0 = vcmp.ge.s32.totalorder %v770_v2, %v791_v7  ;;  %s242_s30 = scalar_lea.vmem [#allocation7], %s683_s26  ;;  %vm262_vm13 = vcmp.gt.s32.totalorder %v770_v2, %v791_v7  ;;  %s173_s26 = sadd.s32 1, %s683_s26  }
  0x27   : >> { %vm254_vm10 = vcmp.gt.s32.totalorder %v230_v37, %v791_v7  ;;  %vm231_vm11 = vcmp.eq.s32.totalorder %v230_v37, %v791_v7  ;;  %p170_p11 = scmp.ge.s32.totalorder %s173_s26, 8  }
  0x28   : >> { %vm266_vm15 = vmand %vm262_vm13, %vm231_vm11  ;;  %s892_s6 = sshrl.u32 (%p170_p11), %s728_s16, 3  ;;  %s556_s8 = sshll.u32 (%p170_p11), %s728_s16, 3 }
  0x29   : > { %s557_s10 = sshll.u32 (%p170_p11), %s892_s6, 5  ;;  %s686_s6 = smov (%p170_p11), [#allocation3]  }
  0x2a   : >> { %v178_v5 = vld [vmem:[%s772_s11] sm:$0xff]  ;;  %v238_v40 = vld [vmem:[%s236_s28] ss:$0 sm:$0xff]  ;;  %s617_s17 = sshll.u32 (%p170_p11), %s686_s6, 4  ;;  %s618_s17 = int_to_ptr.vmem [resolvable:$false] %s617_s17 }
  0x2b   : >> { %v179_v6 = vand.u32 2147483647, %v178_v5  ;;  %v233_v39 = vld [vmem:[%s777_s19] ss:$0 sm:$0xff] }
  0x2c   : >> { %v244_v41 = vld [vmem:[%s242_s30] ss:$0 sm:$0xff] }
  0x2d   : >> { %vm552_vm1 = vcmp.gt.f32.partialorder %v179_v6, -inf }
  0x2e   : >> { %vm186_vm2 = vmand %vm182_vm0, %vm552_vm1 }
  0x2f   : >> { %v187_v8 = vsel %vm186_vm2, %v770_v2, %v791_v7  ;;  %v188_v9 = vsel %vm186_vm2, %v179_v6, -inf }
  0x30   : >> { %v189_v10 = vrot.slane %v188_v9, 1  ;;  %v190_v11 = vrot.slane %v187_v8, 1 }
  0x32   : >> { %vm191_vm3 = vcmp.ge.f32.partialorder %v189_v10, %v188_v9  ;;  %v194_v12 = vrot.slane %v189_v10, 1  ;;  %v195_v13 = vrot.slane %v190_v11, 1 }
  0x33   : >> { %v192_v14 = vsel %vm191_vm3, %v189_v10, %v188_v9  ;;  %v193_v15 = vsel %vm191_vm3, %v190_v11, %v187_v8 }
  0x34   : >> { %vm196_vm4 = vcmp.ge.f32.partialorder %v194_v12, %v192_v14  ;;  %v199_v16 = vrot.slane %v194_v12, 1  ;;  %v200_v17 = vrot.slane %v195_v13, 1 }
  0x35   : >> { %v197_v18 = vsel %vm196_vm4, %v194_v12, %v192_v14  ;;  %v198_v19 = vsel %vm196_vm4, %v195_v13, %v193_v15 }
  0x36   : >> { %vm201_vm5 = vcmp.ge.f32.partialorder %v199_v16, %v197_v18  ;;  %v204_v20 = vrot.slane %v199_v16, 1  ;;  %v205_v21 = vrot.slane %v200_v17, 1 }
  0x37   : >> { %v202_v22 = vsel %vm201_vm5, %v199_v16, %v197_v18  ;;  %v203_v23 = vsel %vm201_vm5, %v200_v17, %v198_v19 }
  0x38   : >> { %vm206_vm6 = vcmp.ge.f32.partialorder %v204_v20, %v202_v22  ;;  %v209_v24 = vrot.slane %v204_v20, 1  ;;  %v210_v25 = vrot.slane %v205_v21, 1 }
  0x39   : >> { %v207_v26 = vsel %vm206_vm6, %v204_v20, %v202_v22  ;;  %v208_v27 = vsel %vm206_vm6, %v205_v21, %v203_v23 }
  0x3a   : >> { %vm211_vm7 = vcmp.ge.f32.partialorder %v209_v24, %v207_v26  ;;  %v214_v28 = vrot.slane %v209_v24, 1  ;;  %v215_v29 = vrot.slane %v210_v25, 1 }
  0x3b   : >> { %v212_v30 = vsel %vm211_vm7, %v209_v24, %v207_v26  ;;  %v213_v31 = vsel %vm211_vm7, %v210_v25, %v208_v27 }
  0x3c   : >> { %vm216_vm8 = vcmp.ge.f32.partialorder %v214_v28, %v212_v30  ;;  %v219_v32 = vrot.slane %v214_v28, 1  ;;  %v220_v33 = vrot.slane %v215_v29, 1 }
  0x3d   : >> { %v217_v34 = vsel %vm216_vm8, %v214_v28, %v212_v30  ;;  %v218_v35 = vsel %vm216_vm8, %v215_v29, %v213_v31 }
  0x3e   : >> { %vm221_vm9 = vcmp.ge.f32.partialorder %v219_v32, %v217_v34 }
  0x3f   : >> { %v223_v36 = vsel %vm221_vm9, %v220_v33, %v218_v35 }
  0x40   : >> { %225 = vrot.lane.b32.xlu0 %v223_v36, %s224_s27 }
  0xb2   : >> { %v226_v38 = vpop.permute.xlu0 %225 }
  0xb3   : >> { %561 = vpush %v226_v38 }
  0xe4   : >> { %s562_s29 = spop %561 }
  0xe5   : >> { %v232_v42 = vstv %s562_s29  ;;  %s237_s4 = scalar_lea.vmem %s772_s11, %s562_s29 [#allocation1]  ;;  %s243_s5 = scalar_lea.vmem [#allocation7], %s562_s29 }
  0xe6   : >> { %v239_v43 = vld [vmem:[%s237_s4] ss:$0 sm:$0xff]  ;;  %v234_v45 = vsel %vm231_vm11, %v232_v42, %v233_v39  ;;  %s835_s29 = scalar_lea.hbm (%p170_p11), %s890_s2, %s557_s10 }
  0xe7   : >> { %v245_v44 = vld [vmem:[%s243_s5] ss:$0 sm:$0xff]  ;;  %240 = vst [vmem:[%s237_s4] sm:$0x1] %v238_v40  ;;  %vm248_vm12 = vcmp.ne.f32.partialorder %v239_v43, 0.0  ;;  %235 = vst [vmem:[%s777_s19] sm:$0x1] %v234_v45  ;;  %v255_v52 = vsel %vm254_vm10, %v239_v43, 0.0  ;;  %s348_s19 = scalar_lea.vmem (%p170_p11), %s889_s1, %s556_s8 }
  0xe8   : >> { %246 = vst [vmem:[%s243_s5] sm:$0x1] %v244_v41  ;;  %241 = vst [vmem:[%s236_s28] sm:$0x1] %v239_v43  ;;  %s339_s4 = scalar_lea.sflag (%p170_p11), [#allocation4], %s145_s7 }
  0xe9   : >> { %247 = vst [vmem:[%s242_s30] sm:$0x1] %v245_v44  ;;  %vm249_vm14 = vmand %vm231_vm11, %vm248_vm12  ;;  %s391_s30 = sshll.u32 (%p170_p11), %s147_s20, 4  ;;  %s392_s30 = int_to_ptr.vmem [resolvable:$true] %s391_s30 }
  0xea   : >> { %v250_v46 = vsel %vm249_vm14, %v239_v43, 1.0  ;;  %s613_s5 = scalar_lea.vmem (%p170_p11), %s392_s30, 32  ;;  %p620_p1 = scmp.lt.s32.totalorder (%p170_p11), %s392_s30, %s618_s17 }
  0xeb   : >> { %v263_v47 = vsel %vm262_vm13, %v250_v46, 1.0  ;;  %p614_p12 = scmp.ne.s32.totalorder (%p170_p11), %s392_s30, %s613_s5 }
  0xec   : >> { %611 = vrcp.f32 %v263_v47 }
  0xed   : > { %p615_p13 = pnand (%p170_p11), %p614_p12, %p745_p5 }
  0xee   : > { %v325_v57 = vld [vmem:[#allocation2] sm:$0x3] (%p170_p11) }
  0xef   : >> { %v259_v49 = vld [vmem:[%s772_s11] sm:$0xff]  ;;  %327 = vst [vmem:[%s147_s20] sm:$0x3] (%p170_p11), %v325_v57  ;;  %p616_p0 = pneg (%p170_p11), %p615_p13 }
  0xf0   : > { %v273_v56 = vld [vmem:[#allocation7] sm:$0xff] (%p170_p11) }
  0xf6   : >> { %v612_v48 = vpop.eup %611 }
  0xf7   : >> { %v265_v50 = vmul.f32 %v612_v48, %v259_v49 }
  0xf9   : >> { %v267_v51 = vsel %vm266_vm15, %v265_v50, 0.0 }
  0xfa   : >> { %268 = vadd.xlane.f32.xlu0 %v267_v51 }
 0x127   : > { %289 = vxpose.xlu0.b32.start.end [1/1] (short) (narrow) (%p170_p11), %v273_v56, 8 }
 0x186   : > { %172 = sbr.rel (!%p170_p11) target bundleno = 37 (0x25), region = 210 }
 0x187   : >> { %v269_v53 = vpop.xlane.xlu0 %268 }
 0x188   : >> { %v270_v54 = vmul.f32 %v269_v53, %v255_v52 }
 0x18a   : >> { %v271_v55 = vsub.f32 %v265_v50, %v270_v54 }
 0x18c   : >> { %272 = vst [vmem:[%s772_s11] sm:$0xff] %v271_v55 }
 0x193   : > { %v376_v58 = vld [vmem:[%s772_s11] sm:$0xff]  ;;  %s619_s11 = scalar_lea.vmem %s618_s17, 64 }
 0x194   : > { %377 = vst [vmem:[%s348_s19] sm:$0xff] %v376_v58  ;;  %p621_p2 = scmp.lt.s32.totalorder %s619_s11, %s613_s5 }
 0x196   : > { %p622_p3 = por %p621_p2, %p620_p1 }
 0x198   : > { %p623_p4 = pnand %p622_p3, %p616_p0 }
 0x19a   : > { %626 = shalt.err (!%p623_p4)
}
 0x19b   : > { %s627_s7 = scalar_lea.hbm %s835_s29, 32  ;;  %s631_s6 = scalar_lea.hbm %s890_s2, 32 }
 0x19c   : > { %p628_p8 = scmp.ne.s32.totalorder %s835_s29, %s627_s7  ;;  %p632_p11 = scmp.lt.u32.totalorder %s835_s29, %s890_s2 }
 0x19d   : > { %p633_p12 = scmp.lt.u32.totalorder %s631_s6, %s627_s7  ;;  %p635_p0 = scmp.lt.u32.totalorder %s627_s7, %s835_s29 }
 0x19e   : > { %p629_p9 = pnand %p628_p8, %p745_p5 }
 0x19f   : > { %p634_p13 = por %p633_p12, %p632_p11 }
 0x1a0   : > { %p630_p10 = pneg %p629_p9 }
 0x1a1   : > { %p636_p1 = por %p635_p0, %p634_p13 }
 0x1a3   : > { %p637_p2 = pnand %p636_p1, %p630_p10 }
 0x1a5   : > { %640 = shalt.err (!%p637_p2)
}
 0x1a6   : > { %563 = dma.vmem_to_hbm [thread:$0]  (%p745_p5), %s392_s30, 32, %s835_s29, %s339_s4  }
 0x1a7   : > { %v305_v59 = vpop.trf.xlu0  ;;  %s895_s19 = sshrl.u32 (%p745_p5), %s728_s16, 3 }
 0x1a8   : > { %321 = vst [vmem:[%s782_s22] sm:$0x1] %v305_v59  ;;  %s558_s27 = sshll.u32 (%p745_p5), %s895_s19, 1 }
 0x1a9   : > { %s400_s17 = scalar_lea.vmem (%p745_p5), %s891_s3, %s558_s27 }
 0x1aa   : > { %397 = sbr.rel (!%p745_p5) target bundleno = 441 (0x1b9), region = 104 }
 0x1af   : > { %v331_v60 = vld [vmem:[#allocation5] sm:$0x3] }
 0x1b0   : > { %333 = vst [vmem:[%s153_s21] sm:$0x3] %v331_v60 }
 0x1b7   : > { %v416_v61 = vld [vmem:[%s153_s21] sm:$0x3] }
 0x1b8   : > { %417 = vst [vmem:[%s400_s17] sm:$0x3] %v416_v61 }
 0x1b9 PF: > { %s444_s22 = sand.u32 1, %s667_s12   ;;  %p566_p5 = pnand %p544_p7, %p749_p6 }
 0x1ba   : > { %s445_s24 = scalar_lea.sflag [#allocation4], %s444_s22 }
 0x1bb   : > { %662 = dma.done.wait (!%p566_p5), %s445_s24, 32  }
 0x1bc   : > { %664 = vsyncadd (!%p566_p5), %s445_s24, 4294967264  ;;  %p10_p3 = scmp.ge.s32.totalorder %s732_s18, 4   ;;  %s896_s12 = smov %s671_s13 }
 0x1bd   : > { %s897_s13 = smov %s675_s14  ;;  %s898_s14 = smov %s743_s23 }
 0x1be   : > { %s899_s15 = smov %s732_s18  ;;  %12 = sbr.rel (!%p10_p3) target bundleno = 3 (0x3), region = 221 }
 0x1c5   :  { %457 = vsyncpa [#allocation4], 1 }
 0x1c6   :  { %459 = vsyncpa [#allocation4 + $0x1], 1 }

// kernel: custom-call.63
= control target key start
LH: loop header
LB: loop body
LE: loop exit
PB: predicated region body
PF: predicated region fallthrough
CT: control target
= control target key end

     0   :  { %s384_s6 = smov 0   ;;  %s386_s7 = smov 0   ;;  %s442_s0 = inlined_call_operand.vmem [shape: f32[2,1,8,8], index: 0, kind: input, shape index: {}]   ;;  %s443_s1 = inlined_call_operand.vmem [shape: f32[2,1,8,8], index: 1, kind: output, shape index: {}]  }
   0x1   :  { %s388_s8 = smov 0  }
   0x2 LB: > { %s310_s9 = sadd.s32 4294967295, %s371_s8   ;;  %s33_s10 = sadd.s32 1, %s367_s7  ;;  %s371_s8 = sphi %s388_s8, %s7_s8   ;;  %s367_s7 = sphi %s386_s7, %s445_s7   ;;  %s363_s6 = sphi %s384_s6, %s444_s6  }
   0x3   : > { %p35_p0 = scmp.ge.s32.totalorder %s33_s10, 2  ;;  %p312_p1 = scmp.ge.s32.totalorder %s371_s8, 2 }
   0x4   : > { %s49_s11 = sand.u32 (!%p312_p1), 1, %s371_s8   ;;  %s314_s12 = sshll.u32 (!%p312_p1), %s367_s7, 3 }
   0x5   : > { %s447_s10 = smov (%p35_p0, %s33_s10), 0  ;;  %47 = sbr.rel (%p312_p1) target bundleno = 12 (0xc), region = 16 }
   0x6   : > { %s313_s13 = sshll.u32 (!%p312_p1), %s49_s11, 3  ;;  %s56_s16 = scalar_lea.vmem (!%p312_p1), %s442_s0, %s314_s12 }
   0x7   : > { %v84_v0 = vld [vmem:[%s56_s16] sm:$0xff] (!%p312_p1)  ;;  %s51_s17 = scalar_lea.vmem (!%p312_p1), [#allocation0], %s313_s13 }
   0x8   : > { %85 = vst [vmem:[%s51_s17] sm:$0xff] (!%p312_p1), %v84_v0 }
   0xc PF: > { %p315_p2 = scmp.ge.s32.totalorder %s371_s8, 1  ;;  %p90_p3 = scmp.lt.s32.totalorder %s371_s8, 3 }
   0xe   : > { %p91_p4 = pnand %p315_p2, %p90_p3 }
  0x10   : > { %94 = sbr.rel (%p91_p4) target bundleno = 1213 (0x4bd), region = 54 }
  0x17   : > { %s97_s18 = sand.u32 1, %s310_s9   ;;  %v108_v1 = vlaneseq  ;;  %v373_v10 = vmov -1.0   ;;  %s319_s21 = sshll.u32 %s363_s6, 3 }
  0x18   : > { %s316_s19 = sshll.u32 %s97_s18, 3  ;;  %s218_s24 = scalar_lea.vmem %s443_s1, %s319_s21 }
  0x19   : > { %v411_v2 = vand.u32 127, %v108_v1  ;;  %v112_v3 = vshrl.u32 %v108_v1, 7  ;;  %s99_s20 = scalar_lea.vmem [#allocation0], %s316_s19 }
  0x1a   : > { %v115_v4 = vld [vmem:[%s99_s20] sm:$0xff] }
  0x1b   : > { %vm110_vm0 = vcmp.lt.s32.totalorder %v411_v2, 8  ;;  %vm114_vm1 = vcmp.eq.s32.totalorder %v112_v3, %v411_v2  ;;  %vm119_vm2 = vcmp.le.s32.totalorder %v112_v3, %v411_v2  ;;  %vm133_vm4 = vcmp.eq.s32.totalorder %v411_v2, 7 }
  0x1c   : > { %v116_v5 = vsel %vm114_vm1, %v115_v4, 0.0  ;;  %vm120_vm3 = vmand %vm119_vm2, %vm110_vm0  ;;  %vm130_vm5 = vcmp.eq.s32.totalorder %v411_v2, %v112_v3  ;;  %v134_v11 = vsel %vm133_vm4, 1.0, %v373_v10  ;;  %vm141_vm6 = vcmp.eq.s32.totalorder %v411_v2, 6 }
  0x1d   : > { %v121_v6 = vsel %vm120_vm3, %v115_v4, 0.0  ;;  %117 = vadd.xlane.f32.xlu0 %v116_v5  ;;  %v135_v12 = vsel %vm130_vm5, %v134_v11, 0.0  ;;  %vm151_vm7 = vcmp.eq.s32.totalorder %v411_v2, 5  ;;  %vm161_vm8 = vcmp.eq.s32.totalorder %v411_v2, 4 }
  0x1e   : > { %vm171_vm9 = vcmp.eq.s32.totalorder %v411_v2, 3  ;;  %vm181_vm10 = vcmp.eq.s32.totalorder %v411_v2, 2  ;;  %vm191_vm11 = vcmp.eq.s32.totalorder %v411_v2, 1  ;;  %vm200_vm12 = vcmp.eq.s32.totalorder %v411_v2, 0 }
  0xaa   : > { %v416_v7 = vpop.xlane.xlu0 %117 }
  0xab   : > { %347 = vrcp.f32 %v416_v7  ;;  %vm207_vm13 = vweird.f32 %v416_v7 }
  0xb5   : > { %v348_v8 = vpop.eup %347 }
  0xb6   : > { %v123_v9 = vmul.f32 %v348_v8, %v121_v6 }
  0xb8   : > { %124 = vst [vmem:[#allocation2] sm:$0xff] %v123_v9 }
  0xbf   : > { %v137_v13 = vld [vmem:[#allocation2 + $0x6] ss:$0 sm:$0xff]  ;;  %v147_v16 = vld [vmem:[#allocation2 + $0x5] ss:$0 sm:$0xff]  ;;  %v157_v21 = vld [vmem:[#allocation2 + $0x4] ss:$0 sm:$0xff] }
  0xc0   : > { %v138_v14 = vxor.u32 2147483648, %v137_v13  ;;  %v148_v18 = vxor.u32 2147483648, %v147_v16  ;;  %v158_v23 = vxor.u32 2147483648, %v157_v21  ;;  %v167_v26 = vld [vmem:[#allocation2 + $0x3] ss:$0 sm:$0xff] }
  0xc1   : > { %v168_v28 = vxor.u32 2147483648, %v167_v26  ;;  %v177_v31 = vld [vmem:[#allocation2 + $0x2] ss:$0 sm:$0xff]  ;;  %v187_v36 = vld [vmem:[#allocation2 + $0x1] ss:$0 sm:$0xff] }
  0xc2   : > { %v142_v15 = vmul.f32 %v138_v14, %v135_v12  ;;  %v178_v33 = vxor.u32 2147483648, %v177_v31  ;;  %v188_v38 = vxor.u32 2147483648, %v187_v36  ;;  %v196_v41 = vld [vmem:[#allocation2] ss:$0 sm:$0xff] }
  0xc3   : > { %v197_v43 = vxor.u32 2147483648, %v196_v41 }
  0xc4   : > { %143 = vadd.xlane.f32.xlu0 %v142_v15 }
 0x151   : > { %v144_v17 = vpop.xlane.xlu0 %143 }
 0x152   : > { %v145_v19 = vsel %vm141_vm6, %v144_v17, %v135_v12 }
 0x153   : > { %v152_v20 = vmul.f32 %v148_v18, %v145_v19 }
 0x155   : > { %153 = vadd.xlane.f32.xlu1 %v152_v20 }
 0x1e2   : > { %v154_v22 = vpop.xlane.xlu1 %153 }
 0x1e3   : > { %v155_v24 = vsel %vm151_vm7, %v154_v22, %v145_v19 }
 0x1e4   : > { %v162_v25 = vmul.f32 %v158_v23, %v155_v24 }
 0x1e6   : > { %163 = vadd.xlane.f32.xlu1 %v162_v25 }
 0x273   : > { %v164_v27 = vpop.xlane.xlu1 %163 }
 0x274   : > { %v165_v29 = vsel %vm161_vm8, %v164_v27, %v155_v24 }
 0x275   : > { %v172_v30 = vmul.f32 %v168_v28, %v165_v29 }
 0x277   : > { %173 = vadd.xlane.f32.xlu0 %v172_v30 }
 0x304   : > { %v174_v32 = vpop.xlane.xlu0 %173 }
 0x305   : > { %v175_v34 = vsel %vm171_vm9, %v174_v32, %v165_v29 }
 0x306   : > { %v182_v35 = vmul.f32 %v178_v33, %v175_v34 }
 0x308   : > { %183 = vadd.xlane.f32.xlu1 %v182_v35 }
 0x395   : > { %v184_v37 = vpop.xlane.xlu1 %183 }
 0x396   : > { %v185_v39 = vsel %vm181_vm10, %v184_v37, %v175_v34 }
 0x397   : > { %v192_v40 = vmul.f32 %v188_v38, %v185_v39 }
 0x399   : > { %193 = vadd.xlane.f32.xlu0 %v192_v40 }
 0x426   : > { %v194_v42 = vpop.xlane.xlu0 %193 }
 0x427   : > { %v195_v44 = vsel %vm191_vm11, %v194_v42, %v185_v39 }
 0x428   : > { %v201_v45 = vmul.f32 %v197_v43, %v195_v44 }
 0x42a   : > { %202 = vadd.xlane.f32.xlu1 %v201_v45 }
 0x4b7   : > { %v203_v46 = vpop.xlane.xlu1 %202 }
 0x4b8   : > { %v204_v47 = vsel %vm200_vm12, %v203_v46, %v195_v44 }
 0x4b9   : > { %v206_v48 = vmul.f32 %v348_v8, %v204_v47 }
 0x4bb   : > { %v208_v49 = vsel %vm207_vm13, %v204_v47, %v206_v48 }
 0x4bc   : > { %247 = vst [vmem:[%s218_s24] sm:$0xff] %v208_v49 }
 0x4bd PF: > { %s7_s8 = sadd.s32 1, %s371_s8   ;;  %s444_s6 = smov %s367_s7 }
 0x4be   : > { %p4_p5 = scmp.ge.s32.totalorder %s7_s8, 4   ;;  %s445_s7 = smov %s447_s10 }
 0x4c0   :  { %6 = sbr.rel (!%p4_p5) target bundleno = 2 (0x2), region = 124 }

// kernel: custom-call.62
= control target key start
LH: loop header
LB: loop body
LE: loop exit
PB: predicated region body
PF: predicated region fallthrough
CT: control target
= control target key end

     0   :  { %s385_s6 = smov 0   ;;  %s387_s7 = smov 0   ;;  %s443_s0 = inlined_call_operand.vmem [shape: f32[2,1,8,8], index: 0, kind: input, shape index: {}]   ;;  %s444_s1 = inlined_call_operand.vmem [shape: f32[2,1,8,8], index: 1, kind: output, shape index: {}]  }
   0x1   :  { %s389_s8 = smov 0  }
   0x2 LB: > { %s311_s9 = sadd.s32 4294967295, %s372_s8   ;;  %s33_s10 = sadd.s32 1, %s368_s7  ;;  %s372_s8 = sphi %s389_s8, %s7_s8   ;;  %s368_s7 = sphi %s387_s7, %s446_s7   ;;  %s364_s6 = sphi %s385_s6, %s445_s6  }
   0x3   : > { %p35_p0 = scmp.ge.s32.totalorder %s33_s10, 2  ;;  %p313_p1 = scmp.ge.s32.totalorder %s372_s8, 2 }
   0x4   : > { %s49_s11 = sand.u32 (!%p313_p1), 1, %s372_s8   ;;  %s315_s12 = sshll.u32 (!%p313_p1), %s368_s7, 3 }
   0x5   : > { %s448_s10 = smov (%p35_p0, %s33_s10), 0  ;;  %47 = sbr.rel (%p313_p1) target bundleno = 12 (0xc), region = 16 }
   0x6   : > { %s314_s13 = sshll.u32 (!%p313_p1), %s49_s11, 3  ;;  %s56_s16 = scalar_lea.vmem (!%p313_p1), %s443_s0, %s315_s12 }
   0x7   : > { %v84_v0 = vld [vmem:[%s56_s16] sm:$0xff] (!%p313_p1)  ;;  %s51_s17 = scalar_lea.vmem (!%p313_p1), [#allocation0], %s314_s13 }
   0x8   : > { %85 = vst [vmem:[%s51_s17] sm:$0xff] (!%p313_p1), %v84_v0 }
   0xc PF: > { %p316_p2 = scmp.ge.s32.totalorder %s372_s8, 1  ;;  %p90_p3 = scmp.lt.s32.totalorder %s372_s8, 3 }
   0xe   : > { %p91_p4 = pnand %p316_p2, %p90_p3 }
  0x10   : > { %94 = sbr.rel (%p91_p4) target bundleno = 1213 (0x4bd), region = 54 }
  0x17   : > { %s97_s18 = sand.u32 1, %s311_s9   ;;  %v108_v1 = vlaneseq  ;;  %v374_v10 = vmov -1.0   ;;  %s320_s21 = sshll.u32 %s364_s6, 3 }
  0x18   : > { %s317_s19 = sshll.u32 %s97_s18, 3  ;;  %s219_s24 = scalar_lea.vmem %s444_s1, %s320_s21 }
  0x19   : > { %v412_v2 = vand.u32 127, %v108_v1  ;;  %v112_v3 = vshrl.u32 %v108_v1, 7  ;;  %s99_s20 = scalar_lea.vmem [#allocation0], %s317_s19 }
  0x1a   : > { %v115_v4 = vld [vmem:[%s99_s20] sm:$0xff] }
  0x1b   : > { %vm110_vm0 = vcmp.lt.s32.totalorder %v412_v2, 8  ;;  %vm114_vm1 = vcmp.eq.s32.totalorder %v112_v3, %v412_v2  ;;  %vm119_vm2 = vcmp.ge.s32.totalorder %v112_v3, %v412_v2  ;;  %vm133_vm4 = vcmp.eq.s32.totalorder %v412_v2, 0 }
  0x1c   : > { %v116_v5 = vsel %vm114_vm1, %v115_v4, 0.0  ;;  %vm120_vm3 = vmand %vm119_vm2, %vm110_vm0  ;;  %vm130_vm5 = vcmp.eq.s32.totalorder %v412_v2, %v112_v3  ;;  %v134_v11 = vsel %vm133_vm4, 1.0, %v374_v10  ;;  %vm141_vm6 = vcmp.eq.s32.totalorder %v412_v2, 1 }
  0x1d   : > { %v121_v6 = vsel %vm120_vm3, %v115_v4, 0.0  ;;  %117 = vadd.xlane.f32.xlu0 %v116_v5  ;;  %v135_v12 = vsel %vm130_vm5, %v134_v11, 0.0  ;;  %vm151_vm7 = vcmp.eq.s32.totalorder %v412_v2, 2  ;;  %vm161_vm8 = vcmp.eq.s32.totalorder %v412_v2, 3 }
  0x1e   : > { %vm171_vm9 = vcmp.eq.s32.totalorder %v412_v2, 4  ;;  %vm181_vm10 = vcmp.eq.s32.totalorder %v412_v2, 5  ;;  %vm191_vm11 = vcmp.eq.s32.totalorder %v412_v2, 6  ;;  %vm201_vm12 = vcmp.eq.s32.totalorder %v412_v2, 7 }
  0xaa   : > { %v417_v7 = vpop.xlane.xlu0 %117 }
  0xab   : > { %348 = vrcp.f32 %v417_v7  ;;  %vm208_vm13 = vweird.f32 %v417_v7 }
  0xb5   : > { %v349_v8 = vpop.eup %348 }
  0xb6   : > { %v123_v9 = vmul.f32 %v349_v8, %v121_v6 }
  0xb8   : > { %124 = vst [vmem:[#allocation2] sm:$0xff] %v123_v9 }
  0xbf   : > { %v137_v13 = vld [vmem:[#allocation2 + $0x1] ss:$0 sm:$0xff]  ;;  %v147_v16 = vld [vmem:[#allocation2 + $0x2] ss:$0 sm:$0xff]  ;;  %v157_v21 = vld [vmem:[#allocation2 + $0x3] ss:$0 sm:$0xff] }
  0xc0   : > { %v138_v14 = vxor.u32 2147483648, %v137_v13  ;;  %v148_v18 = vxor.u32 2147483648, %v147_v16  ;;  %v158_v23 = vxor.u32 2147483648, %v157_v21  ;;  %v167_v26 = vld [vmem:[#allocation2 + $0x4] ss:$0 sm:$0xff] }
  0xc1   : > { %v168_v28 = vxor.u32 2147483648, %v167_v26  ;;  %v177_v31 = vld [vmem:[#allocation2 + $0x5] ss:$0 sm:$0xff]  ;;  %v187_v36 = vld [vmem:[#allocation2 + $0x6] ss:$0 sm:$0xff] }
  0xc2   : > { %v142_v15 = vmul.f32 %v138_v14, %v135_v12  ;;  %v178_v33 = vxor.u32 2147483648, %v177_v31  ;;  %v188_v38 = vxor.u32 2147483648, %v187_v36  ;;  %v197_v41 = vld [vmem:[#allocation2 + $0x7] ss:$0 sm:$0xff] }
  0xc3   : > { %v198_v43 = vxor.u32 2147483648, %v197_v41 }
  0xc4   : > { %143 = vadd.xlane.f32.xlu0 %v142_v15 }
 0x151   : > { %v144_v17 = vpop.xlane.xlu0 %143 }
 0x152   : > { %v145_v19 = vsel %vm141_vm6, %v144_v17, %v135_v12 }
 0x153   : > { %v152_v20 = vmul.f32 %v148_v18, %v145_v19 }
 0x155   : > { %153 = vadd.xlane.f32.xlu1 %v152_v20 }
 0x1e2   : > { %v154_v22 = vpop.xlane.xlu1 %153 }
 0x1e3   : > { %v155_v24 = vsel %vm151_vm7, %v154_v22, %v145_v19 }
 0x1e4   : > { %v162_v25 = vmul.f32 %v158_v23, %v155_v24 }
 0x1e6   : > { %163 = vadd.xlane.f32.xlu1 %v162_v25 }
 0x273   : > { %v164_v27 = vpop.xlane.xlu1 %163 }
 0x274   : > { %v165_v29 = vsel %vm161_vm8, %v164_v27, %v155_v24 }
 0x275   : > { %v172_v30 = vmul.f32 %v168_v28, %v165_v29 }
 0x277   : > { %173 = vadd.xlane.f32.xlu0 %v172_v30 }
 0x304   : > { %v174_v32 = vpop.xlane.xlu0 %173 }
 0x305   : > { %v175_v34 = vsel %vm171_vm9, %v174_v32, %v165_v29 }
 0x306   : > { %v182_v35 = vmul.f32 %v178_v33, %v175_v34 }
 0x308   : > { %183 = vadd.xlane.f32.xlu1 %v182_v35 }
 0x395   : > { %v184_v37 = vpop.xlane.xlu1 %183 }
 0x396   : > { %v185_v39 = vsel %vm181_vm10, %v184_v37, %v175_v34 }
 0x397   : > { %v192_v40 = vmul.f32 %v188_v38, %v185_v39 }
 0x399   : > { %193 = vadd.xlane.f32.xlu0 %v192_v40 }
 0x426   : > { %v194_v42 = vpop.xlane.xlu0 %193 }
 0x427   : > { %v195_v44 = vsel %vm191_vm11, %v194_v42, %v185_v39 }
 0x428   : > { %v202_v45 = vmul.f32 %v198_v43, %v195_v44 }
 0x42a   : > { %203 = vadd.xlane.f32.xlu1 %v202_v45 }
 0x4b7   : > { %v204_v46 = vpop.xlane.xlu1 %203 }
 0x4b8   : > { %v205_v47 = vsel %vm201_vm12, %v204_v46, %v195_v44 }
 0x4b9   : > { %v207_v48 = vmul.f32 %v349_v8, %v205_v47 }
 0x4bb   : > { %v209_v49 = vsel %vm208_vm13, %v205_v47, %v207_v48 }
 0x4bc   : > { %248 = vst [vmem:[%s219_s24] sm:$0xff] %v209_v49 }
 0x4bd PF: > { %s7_s8 = sadd.s32 1, %s372_s8   ;;  %s445_s6 = smov %s368_s7 }
 0x4be   : > { %p4_p5 = scmp.ge.s32.totalorder %s7_s8, 4   ;;  %s446_s7 = smov %s448_s10 }
 0x4c0   :  { %6 = sbr.rel (!%p4_p5) target bundleno = 2 (0x2), region = 125 }

// kernel: cphash_forward.1
= control target key start
LH: loop header
LB: loop body
LE: loop exit
PB: predicated region body
PF: predicated region fallthrough
CT: control target
= control target key end

     0   :  { %v806_v1 = vmov 0   ;;  %s1050_s1 = inlined_call_operand.vmem [shape: bf16[384,256], index: 1, kind: input, shape index: {}]   ;;  %s1051_s0 = inlined_call_operand.vmem [shape: bf16[16,384], index: 0, kind: input, shape index: {}]   ;;  %s1052_s3 = inlined_call_operand.vmem [shape: bf16[256,128], index: 3, kind: input, shape index: {}]   ;;  %s1053_s2 = inlined_call_operand.vmem [shape: f32[1,256], index: 2, kind: input, shape index: {}]   ;;  %s1054_s4 = inlined_call_operand.vmem [shape: f32[1,128], index: 4, kind: input, shape index: {}]   ;;  %s1055_s5 = inlined_call_operand.vmem [shape: f32[16,128], index: 5, kind: output, shape index: {}]  }
   0x1   :  { %v714_v0 = vld [vmem:[%s1050_s1 + $0x4] ss:$8 sps:$4 sm:$0xff]   ;;  %416 = vmatprep.mubr.bf16.mxu1 %v806_v1  ;;  %v716_v2 = vld [vmem:[%s1050_s1] ss:$8 sps:$4 sm:$0xff]   ;;  %v717_v3 = vld [vmem:[%s1050_s1 + $0x14] ss:$8 sps:$4 sm:$0xff]  }
   0x2   :  { %341 = vmatprep.subr.bf16.mxu0 %v714_v0  ;;  %v719_v4 = vld [vmem:[%s1050_s1 + $0x10] ss:$8 sps:$4 sm:$0xff]   ;;  %v720_v5 = vld [vmem:[%s1050_s1 + $0x24] ss:$8 sps:$4 sm:$0xff]   ;;  %v722_v6 = vld [vmem:[%s1050_s1 + $0x20] ss:$8 sps:$4 sm:$0xff]  }
   0x3   :  { %342 = vmatpush1.bf16.msra.mxu0 %v716_v2  ;;  %v723_v7 = vld [vmem:[%s1050_s1 + $0x34] ss:$8 sps:$4 sm:$0xff]   ;;  %v725_v8 = vld [vmem:[%s1050_s1 + $0x30] ss:$8 sps:$4 sm:$0xff]   ;;  %v738_v9 = vld [vmem:[%s1050_s1 + $0x104] ss:$8 sps:$4 sm:$0xff]  }
   0x4   :  { %343 = vmatprep.subr.bf16.mxu0 %v717_v3  ;;  %v726_v10 = vld [vmem:[%s1050_s1 + $0x44] ss:$8 sps:$4 sm:$0xff]   ;;  %v742_v11 = vld [vmem:[%s1050_s1 + $0x100] ss:$8 sps:$4 sm:$0xff]   ;;  %384 = vmatprep.subr.bf16.mxu1 %v738_v9  ;;  %v744_v12 = vld [vmem:[%s1050_s1 + $0x114] ss:$8 sps:$4 sm:$0xff]  }
   0x5   :  { %385 = vmatpush1.bf16.msra.mxu1 %v742_v11  ;;  %v728_v13 = vld [vmem:[%s1050_s1 + $0x40] ss:$8 sps:$4 sm:$0xff]   ;;  %v729_v14 = vld [vmem:[%s1050_s1 + $0x54] ss:$8 sps:$4 sm:$0xff]   ;;  %v748_v15 = vld [vmem:[%s1050_s1 + $0x110] ss:$8 sps:$4 sm:$0xff]  }
   0x6   :  { %386 = vmatprep.subr.bf16.mxu1 %v744_v12  ;;  %v750_v16 = vld [vmem:[%s1050_s1 + $0x124] ss:$8 sps:$4 sm:$0xff]   ;;  %v731_v17 = vld [vmem:[%s1050_s1 + $0x50] ss:$8 sps:$4 sm:$0xff]   ;;  %v754_v18 = vld [vmem:[%s1050_s1 + $0x120] ss:$8 sps:$4 sm:$0xff]  }
   0x7   :  { %344 = vmatpush1.bf16.msra.mxu0 %v719_v4  ;;  %v756_v19 = vld [vmem:[%s1050_s1 + $0x134] ss:$8 sps:$4 sm:$0xff]   ;;  %v732_v20 = vld [vmem:[%s1050_s1 + $0x64] ss:$8 sps:$4 sm:$0xff]   ;;  %v760_v21 = vld [vmem:[%s1050_s1 + $0x130] ss:$8 sps:$4 sm:$0xff]  }
   0x8   :  { %345 = vmatprep.subr.bf16.mxu0 %v720_v5  ;;  %v734_v22 = vld [vmem:[%s1050_s1 + $0x60] ss:$8 sps:$4 sm:$0xff]   ;;  %v762_v23 = vld [vmem:[%s1050_s1 + $0x144] ss:$8 sps:$4 sm:$0xff]   ;;  %v735_v24 = vld [vmem:[%s1050_s1 + $0x74] ss:$8 sps:$4 sm:$0xff]  }
   0x9   :  { %387 = vmatpush1.bf16.msra.mxu1 %v748_v15  ;;  %v737_v25 = vld [vmem:[%s1050_s1 + $0x70] ss:$8 sps:$4 sm:$0xff]   ;;  %v766_v26 = vld [vmem:[%s1050_s1 + $0x140] ss:$8 sps:$4 sm:$0xff]   ;;  %v768_v27 = vld [vmem:[%s1050_s1 + $0x154] ss:$8 sps:$4 sm:$0xff]  }
   0xa   :  { %388 = vmatprep.subr.bf16.mxu1 %v750_v16  ;;  %v740_v28 = vld [vmem:[%s1050_s1 + $0x84] ss:$8 sps:$4 sm:$0xff]   ;;  %v772_v29 = vld [vmem:[%s1050_s1 + $0x150] ss:$8 sps:$4 sm:$0xff]   ;;  %v743_v30 = vld [vmem:[%s1050_s1 + $0x80] ss:$8 sps:$4 sm:$0xff]  }
   0xb   :  { %346 = vmatpush1.bf16.msra.mxu0 %v722_v6  ;;  %v774_v31 = vld [vmem:[%s1050_s1 + $0x164] ss:$8 sps:$4 sm:$0xff]   ;;  %v746_v32 = vld [vmem:[%s1050_s1 + $0x94] ss:$8 sps:$4 sm:$0xff]   ;;  %v749_v33 = vld [vmem:[%s1050_s1 + $0x90] ss:$8 sps:$4 sm:$0xff]  }
   0xc   :  { %347 = vmatprep.subr.bf16.mxu0 %v723_v7  ;;  %v788_v34 = vld [vmem:[%s1051_s0 + $0x4] ss:$12 sps:$4 sm:$0xff]   ;;  %v778_v35 = vld [vmem:[%s1050_s1 + $0x160] ss:$8 sps:$4 sm:$0xff]   ;;  %v780_v36 = vld [vmem:[%s1050_s1 + $0x174] ss:$8 sps:$4 sm:$0xff]  }
   0xd   :  { %389 = vmatpush1.bf16.msra.mxu1 %v754_v18  ;;  %v752_v37 = vld [vmem:[%s1050_s1 + $0xa4] ss:$8 sps:$4 sm:$0xff]   ;;  %373 = vmatprep.mubr.bf16.mxu0 %v788_v34  ;;  %v755_v38 = vld [vmem:[%s1050_s1 + $0xa0] ss:$8 sps:$4 sm:$0xff]   ;;  %v784_v39 = vld [vmem:[%s1050_s1 + $0x170] ss:$8 sps:$4 sm:$0xff]  }
   0xe   :  { %390 = vmatprep.subr.bf16.mxu1 %v756_v19  ;;  %v790_v40 = vld [vmem:[%s1052_s3 + $0x40] sm:$0xff]   ;;  %v758_v41 = vld [vmem:[%s1050_s1 + $0xb4] ss:$8 sps:$4 sm:$0xff]   ;;  %v761_v42 = vld [vmem:[%s1050_s1 + $0xb0] ss:$8 sps:$4 sm:$0xff]  }
   0xf   :  { %348 = vmatpush1.bf16.msra.mxu0 %v725_v8  ;;  %v789_v43 = vld [vmem:[%s1051_s0 + $0x8] ss:$12 sps:$4 sm:$0xff]   ;;  %v764_v44 = vld [vmem:[%s1050_s1 + $0xc4] ss:$8 sps:$4 sm:$0xff]   ;;  %v773_v52 = vld [vmem:[%s1050_s1 + $0xd0] ss:$8 sps:$4 sm:$0xff]   ;;  %v75_v8 = vlaneseq }
  0x10   :  { %349 = vmatprep.subr.bf16.mxu0 %v726_v10  ;;  %v791_v45 = vld [vmem:[%s1052_s3] sm:$0xff]   ;;  %v792_v46 = vld [vmem:[%s1052_s3 + $0x48] sm:$0xff]   ;;  %v794_v49 = vld [vmem:[%s1052_s3 + $0x50] sm:$0xff]  }
  0x11   :  { %391 = vmatpush1.bf16.msra.mxu1 %v760_v21  ;;  %v793_v47 = vld [vmem:[%s1052_s3 + $0x8] sm:$0xff]   ;;  %v770_v50 = vld [vmem:[%s1050_s1 + $0xd4] ss:$8 sps:$4 sm:$0xff]   ;;  %v798_v57 = vld [vmem:[%s1052_s3 + $0x60] sm:$0xff]   ;;  %v76_v9 = vshrl.u32 %v75_v8, 7 }
  0x12   :  { %392 = vmatprep.subr.bf16.mxu1 %v762_v23  ;;  %v767_v48 = vld [vmem:[%s1050_s1 + $0xc0] ss:$8 sps:$4 sm:$0xff]   ;;  %v795_v51 = vld [vmem:[%s1052_s3 + $0x10] sm:$0xff]   ;;  %v796_v53 = vld [vmem:[%s1052_s3 + $0x58] sm:$0xff]  }
  0x13   :  { %350 = vmatpush1.bf16.msra.mxu0 %v728_v13  ;;  %v776_v54 = vld [vmem:[%s1050_s1 + $0xe4] ss:$8 sps:$4 sm:$0xff]   ;;  %v797_v55 = vld [vmem:[%s1052_s3 + $0x18] sm:$0xff]   ;;  %v779_v56 = vld [vmem:[%s1050_s1 + $0xe0] ss:$8 sps:$4 sm:$0xff]   ;;  %v77_v10 = vsub.s32 0, %v76_v9 }
  0x14   :  { %351 = vmatprep.subr.bf16.mxu0 %v729_v14  ;;  %v782_v58 = vld [vmem:[%s1050_s1 + $0xf4] ss:$8 sps:$4 sm:$0xff]   ;;  %v799_v59 = vld [vmem:[%s1052_s3 + $0x20] sm:$0xff]   ;;  %v785_v60 = vld [vmem:[%s1050_s1 + $0xf0] ss:$8 sps:$4 sm:$0xff]   ;;  %v81_v12 = vsub.s32 1, %v76_v9 }
  0x15   :  { %393 = vmatpush1.bf16.msra.mxu1 %v766_v26  ;;  %v786_v61 = vld [vmem:[%s1051_s0] ss:$12 sps:$4 sm:$0xff]   ;;  %v802_v0 = vld [vmem:[%s1052_s3 + $0x70] sm:$0xff]   ;;  %v804_v2 = vld [vmem:[%s1052_s3 + $0x78] sm:$0xff]  }
  0x16   :  { %394 = vmatprep.subr.bf16.mxu1 %v768_v27  ;;  %v800_v62 = vld [vmem:[%s1052_s3 + $0x68] sm:$0xff]   ;;  %v803_v1 = vld [vmem:[%s1052_s3 + $0x30] sm:$0xff]   ;;  %v805_v3 = vld [vmem:[%s1052_s3 + $0x38] sm:$0xff]  }
  0x17   :  { %352 = vmatpush1.bf16.msra.mxu0 %v731_v17  ;;  %v801_v63 = vld [vmem:[%s1052_s3 + $0x28] sm:$0xff]   ;;  %v73_v11 = vld [vmem:[%s1053_s2] sm:$0x3] }
  0x18   :  { %353 = vmatprep.subr.bf16.mxu0 %v732_v20  ;;  %v78_v13 = vrot.slane %v73_v11, %v77_v10  ;;  %v82_v14 = vrot.slane %v73_v11, %v81_v12  ;;  %v666_v34 = vld [vmem:[%s1054_s4] ss:$0 sm:$0xff] }
  0x19   :  { %395 = vmatpush1.bf16.msra.mxu1 %v772_v29 }
  0x1a   :  { %396 = vmatprep.subr.bf16.mxu1 %v774_v31 }
  0x1b   :  { %354 = vmatpush1.bf16.msra.mxu0 %v734_v22 }
  0x1c   :  { %355 = vmatprep.subr.bf16.mxu0 %v735_v24 }
  0x1d   :  { %397 = vmatpush1.bf16.msra.mxu1 %v778_v35 }
  0x1e   :  { %398 = vmatprep.subr.bf16.mxu1 %v780_v36 }
  0x1f   :  { %356 = vmatpush1.bf16.msra.mxu0 %v737_v25 }
  0x20   :  { %357 = vmatprep.subr.bf16.mxu0 %v740_v28 }
  0x21   :  { %399 = vmatpush1.bf16.msra.mxu1 %v784_v39 }
  0x22   :  { %683 = vmatprep.subr.bf16.mxu1 %v790_v40 }
  0x23   :  { %358 = vmatpush1.bf16.msra.mxu0 %v743_v30 }
  0x24   :  { %359 = vmatprep.subr.bf16.mxu0 %v746_v32  ;;  %417 = vmatmul.mubr.bf16.vlgmr.msra.gmra.mrb[0].mxu1 %v789_v43 }
  0x25   :  { %684 = vmatpush3.bf16.msra.mxu1 %v791_v45 }
  0x26   :  { %685 = vmatprep.subr.bf16.mxu1 %v792_v46 }
  0x27   :  { %360 = vmatpush1.bf16.msra.mxu0 %v749_v33 }
  0x28   :  { %361 = vmatprep.subr.bf16.mxu0 %v752_v37 }
  0x29   :  { %686 = vmatpush3.bf16.msra.mxu1 %v793_v47 }
  0x2a   :  { %687 = vmatprep.subr.bf16.mxu1 %v794_v49 }
  0x2b   :  { %362 = vmatpush1.bf16.msra.mxu0 %v755_v38 }
  0x2c   :  { %363 = vmatprep.subr.bf16.mxu0 %v758_v41 }
  0x2d   :  { %688 = vmatpush3.bf16.msra.mxu1 %v795_v51 }
  0x2e   :  { %689 = vmatprep.subr.bf16.mxu1 %v796_v53 }
  0x2f   :  { %364 = vmatpush1.bf16.msra.mxu0 %v761_v42 }
  0x30   :  { %365 = vmatprep.subr.bf16.mxu0 %v764_v44 }
  0x31   :  { %690 = vmatpush3.bf16.msra.mxu1 %v797_v55 }
  0x32   :  { %691 = vmatprep.subr.bf16.mxu1 %v798_v57 }
  0x33   :  { %366 = vmatpush1.bf16.msra.mxu0 %v767_v48 }
  0x34   :  { %367 = vmatprep.subr.bf16.mxu0 %v770_v50 }
  0x35   :  { %692 = vmatpush3.bf16.msra.mxu1 %v799_v59 }
  0x36   :  { %693 = vmatprep.subr.bf16.mxu1 %v800_v62 }
  0x37   :  { %368 = vmatpush1.bf16.msra.mxu0 %v773_v52 }
  0x38   :  { %369 = vmatprep.subr.bf16.mxu0 %v776_v54 }
  0x39   :  { %694 = vmatpush3.bf16.msra.mxu1 %v801_v63 }
  0x3a   :  { %695 = vmatprep.subr.bf16.mxu1 %v802_v0 }
  0x3b   :  { %370 = vmatpush1.bf16.msra.mxu0 %v779_v56 }
  0x3c   :  { %371 = vmatprep.subr.bf16.mxu0 %v782_v58 }
  0x3d   :  { %696 = vmatpush3.bf16.msra.mxu1 %v803_v1 }
  0x3e   :  { %697 = vmatprep.subr.bf16.mxu1 %v804_v2 }
  0x3f   :  { %372 = vmatpush1.bf16.msra.mxu0 %v785_v60 }
  0x41   :  { %698 = vmatpush3.bf16.msra.mxu1 %v805_v3 }
  0x42   :  { %374 = vmatmul.mubr.bf16.vlgmr.msra.gmra.mrb[0].mxu0 %v786_v61 }
  0xf7   :  { %v418_v4 = vpop.f32.mrb[0].mxu1 }
  0xf8   :  { %v420_v5 = vpop.f32.mrb[1].mxu1 }
  0xf9   :  { %v422_v6 = vpop.f32.mrb[2].mxu1 }
  0xfa   :  { %v424_v7 = vpop.f32.mrb[3].mxu1 }
 0x115   :  { %v375_v15 = vpop.f32.mrb[0].mxu0 }
 0x116   :  { %v376_v16 = vadd.f32 %v375_v15, %v78_v13  ;;  %v377_v17 = vpop.f32.mrb[1].mxu0 }
 0x117   :  { %v378_v18 = vadd.f32 %v377_v17, %v82_v14  ;;  %v379_v19 = vpop.f32.mrb[2].mxu0 }
 0x118   :  { %v419_v20 = vadd.f32 %v418_v4, %v376_v16  ;;  %v380_v21 = vadd.f32 %v379_v19, %v78_v13  ;;  %v381_v22 = vpop.f32.mrb[3].mxu0 }
 0x119   :  { %v421_v23 = vadd.f32 %v420_v5, %v378_v18  ;;  %v382_v24 = vadd.f32 %v381_v22, %v82_v14 }
 0x11a   :  { %v423_v25 = vadd.f32 %v422_v6, %v380_v21  ;;  %v427_v27 = vmax.f32 %v419_v20, 0.0 }
 0x11b   :  { %v425_v26 = vadd.f32 %v424_v7, %v382_v24  ;;  %v428_v29 = vmax.f32 %v421_v23, 0.0 }
 0x11c   :  { %v429_v28 = vmax.f32 %v423_v25, 0.0 }
 0x11d   :  { %v430_v30 = vmax.f32 %v425_v26, 0.0 }
 0x11e   :  { %v431_v31 = vpack.c.bf16 %v429_v28, %v427_v27 }
 0x11f   :  { %v432_v32 = vpack.c.bf16 %v430_v30, %v428_v29 }
 0x121   :  { %600 = vmatprep.mubr.bf16.mxu1 %v432_v32 }
 0x122   :  { %601 = vmatmul.mubr.bf16.vlgmr.msra.gmra.mrb[4].mxu1 %v431_v31 }
 0x1f5   :  { %v699_v33 = vpop.f32.mrb[4].mxu1 }
 0x1f6   :  { %v700_v35 = vpop.f32.mrb[5].mxu1 }
 0x1f7   :  { %v701_v36 = vadd.f32 %v700_v35, %v699_v33  ;;  %v702_v37 = vpop.f32.mrb[6].mxu1 }
 0x1f8   :  { %v703_v38 = vpop.f32.mrb[7].mxu1 }
 0x1f9   :  { %v603_v39 = vadd.f32 %v701_v36, %v666_v34  ;;  %v704_v40 = vadd.f32 %v703_v38, %v702_v37 }
 0x1fb   :  { %609 = vst [vmem:[%s1055_s5] sm:$0xff] %v603_v39  ;;  %v606_v41 = vadd.f32 %v704_v40, %v666_v34 }
 0x1fd   :  { %610 = vst [vmem:[%s1055_s5 + $0x8] sm:$0xff] %v606_v41 }

</bundles_post_ra>
